<compile_context>
chip_gen: v7x
topology: tpu7x:2x2x1
jax: 0.10.0
libtpu: 0.0.40
codegen_flags: <defaults>
</compile_context>

<pallas_src>
import functools

import jax
import jax.numpy as jnp
from jax.experimental import pallas as pl
from jax.experimental.pallas import tpu as pltpu


LN_EPS = 1e-5


def state_coupling_kernel(x_ref, w_ref, b_ref, gamma_ref, beta_ref, o_ref,
                          *, dim, row_chunk, compute_dtype):
    # Hoisted loads of the resident (single-buffered) operands.
    w = w_ref[...]                                   # (D, 2D), compute_dtype
    bias = b_ref[...].astype(jnp.float32)            # (1, 2D)
    gamma = gamma_ref[...].astype(jnp.float32)       # (1, D)
    beta = beta_ref[...].astype(jnp.float32)         # (1, D)

    block_rows = x_ref.shape[0]
    n_chunks = block_rows // row_chunk               # static

    # Per-chunk dot -> sigmoid -> LayerNorm -> store, so the epilogue of one
    # chunk overlaps the MXU work of the next and the f32 proj intermediate
    # stays small.
    for c in range(n_chunks):
        rows = pl.ds(c * row_chunk, row_chunk)       # static offset slice
        xc = x_ref[rows, :].astype(compute_dtype)

        # Fused projection: (chunk, D) @ (D, 2D) with f32 accumulation.
        proj = jnp.dot(xc, w, preferred_element_type=jnp.float32) + bias

        gate = jax.nn.sigmoid(proj[:, :dim])
        value = proj[:, dim:]
        h = gate * value

        # LayerNorm over the feature dim (centered two-pass, matches PyTorch).
        mean = jnp.mean(h, axis=-1, keepdims=True)
        centered = h - mean
        var = jnp.mean(centered * centered, axis=-1, keepdims=True)
        out = centered * jax.lax.rsqrt(var + LN_EPS) * gamma + beta

        o_ref[rows, :] = out.astype(o_ref.dtype)


def prepare_params(wr_t, br, wv_t, bv, gamma, beta, compute_dtype=jnp.bfloat16):
    """One-time fusion/cast of the StateCoupling parameters (hoisted out of
    the per-call path).  wr_t / wv_t are (in, out)-layout Linear weights."""
    D = wr_t.shape[0]
    w_cat = jnp.concatenate([wr_t, wv_t], axis=1).astype(compute_dtype)   # (D, 2D)
    b_cat = jnp.concatenate([br, bv]).reshape(1, 2 * D).astype(jnp.float32)
    gamma2 = gamma.reshape(1, D).astype(jnp.float32)
    beta2 = beta.reshape(1, D).astype(jnp.float32)
    return w_cat, b_cat, gamma2, beta2


def _pick_row_tile_and_vmem(M, D, row_tile, x_bytes, out_bytes, w_bytes):
    """Row tile (multiple of 8, grid_m >= 2 when possible) + a VMEM budget
    derived from the actual tile sizes, capped below v7x's 64 MiB physical."""
    m_aligned = ((M + 7) // 8) * 8
    # Cap at ~half the rows so the "parallel" grid axis has >= 2 steps and can
    # shard across v7x's two TensorCores even for small M.
    half = ((pl.cdiv(m_aligned, 2) + 7) // 8) * 8
    tm = max(8, min(row_tile, half))
    tm = (tm // 8) * 8

    def budget(t):
        return (2 * t * D * x_bytes            # double-buffered x tiles
                + 2 * t * D * out_bytes        # double-buffered out tiles
                + D * (2 * D) * w_bytes        # fused weight (single-buffered)
                + 4 * D * 4                    # bias + gamma + beta (f32)
                + t * (2 * D) * 4)             # live f32 proj intermediate (upper bound)

    # Shrink the row tile until the budget fits comfortably under 48 MiB.
    while budget(tm) > (28 << 20) and tm > 8:
        tm = max(8, ((tm // 2) // 8) * 8)

    need = budget(tm)
    # Keep the default scoped limit (32 MiB) unless the tiles actually need
    # more; never exceed 48 MiB (v7x has 64 MiB physical VMEM per TC).
    vmem_limit = min(48 << 20, max(32 << 20, int(1.5 * need) + (2 << 20)))
    return tm, vmem_limit


def state_coupling(x, fused_params, *, row_tile=512, out_dtype=None):
    """x: (..., D). Returns LayerNorm(sigmoid(x@Wr^T+br) * (x@Wv^T+bv)).

    fused_params: output of prepare_params() (fusion/cast done once at init).
    row_tile: max rows of x per grid step (multiple of 8; 512-1024 typical).
    out_dtype: output dtype (defaults to x.dtype; pass bf16 to halve store
               traffic if downstream accepts it).
    """
    w_cat, b_cat, gamma2, beta2 = fused_params
    compute_dtype = w_cat.dtype

    orig_shape = x.shape
    D = orig_shape[-1]
    x2 = x.reshape(-1, D)
    M = x2.shape[0]
    out_dtype = x.dtype if out_dtype is None else out_dtype

    x_bytes = jnp.dtype(x2.dtype).itemsize
    out_bytes = jnp.dtype(out_dtype).itemsize
    w_bytes = jnp.dtype(compute_dtype).itemsize

    tm, vmem_limit = _pick_row_tile_and_vmem(M, D, row_tile,
                                             x_bytes, out_bytes, w_bytes)
    grid_m = pl.cdiv(M, tm)              # partial last block masked by Pallas
    row_chunk = 256 if tm % 256 == 0 else tm

    kernel = functools.partial(state_coupling_kernel, dim=D,
                               row_chunk=row_chunk, compute_dtype=compute_dtype)

    # Advisory cost: one (M, D) @ (D, 2D) matmul + sigmoid/rsqrt epilogue.
    cost = pl.CostEstimate(
        flops=4 * M * D * D,
        transcendentals=M * D + M,
        bytes_accessed=(M * D * x_bytes + M * D * out_bytes
                        + D * 2 * D * w_bytes + 4 * D * 4),
    )

    resident = dict(pipeline_mode=pl.Buffered(1))   # constant index_map => 1 buffer

    out = pl.pallas_call(
        kernel,
        out_shape=jax.ShapeDtypeStruct((M, D), out_dtype),
        grid_spec=pltpu.PrefetchScalarGridSpec(
            num_scalar_prefetch=0,
            grid=(grid_m,),
            in_specs=[
                pl.BlockSpec((tm, D), lambda i: (i, 0)),                   # x row tile
                pl.BlockSpec((D, 2 * D), lambda i: (0, 0), **resident),    # [Wr^T | Wv^T]
                pl.BlockSpec((1, 2 * D), lambda i: (0, 0), **resident),    # [br | bv]
                pl.BlockSpec((1, D), lambda i: (0, 0), **resident),        # LN gamma
                pl.BlockSpec((1, D), lambda i: (0, 0), **resident),        # LN beta
            ],
            out_specs=pl.BlockSpec((tm, D), lambda i: (i, 0)),
        ),
        compiler_params=pltpu.CompilerParams(
            dimension_semantics=("parallel",),
            vmem_limit_bytes=vmem_limit,
        ),
        cost_estimate=cost,
    )(x2, w_cat, b_cat, gamma2, beta2)

    return out.reshape(orig_shape[:-1] + (D,))


def init_params(key, input_dim):
    """Deterministic init mimicking PyTorch nn.Linear / nn.LayerNorm defaults."""
    k1, k2, k3, k4 = jax.random.split(key, 4)
    bound = 1.0 / jnp.sqrt(jnp.float32(input_dim))
    # nn.Linear weight is (out, in); store the transpose (in, out) for x @ W^T.
    wr = jax.random.uniform(k1, (input_dim, input_dim), jnp.float32, -bound, bound)
    br = jax.random.uniform(k2, (input_dim,), jnp.float32, -bound, bound)
    wv = jax.random.uniform(k3, (input_dim, input_dim), jnp.float32, -bound, bound)
    bv = jax.random.uniform(k4, (input_dim,), jnp.float32, -bound, bound)
    gamma = jnp.ones((input_dim,), jnp.float32)
    beta = jnp.zeros((input_dim,), jnp.float32)
    return wr.T, br, wv.T, bv, gamma, beta


def reference(x, wr_t, br, wv_t, bv, gamma, beta, compute_dtype=jnp.float32):
    """Pure-JAX reference; compute_dtype mirrors the kernel's matmul dtype."""
    xc = x.astype(compute_dtype)
    gate_lin = jnp.dot(xc, wr_t.astype(compute_dtype),
                       preferred_element_type=jnp.float32) + br
    value = jnp.dot(xc, wv_t.astype(compute_dtype),
                    preferred_element_type=jnp.float32) + bv
    gate = jax.nn.sigmoid(gate_lin)
    h = gate * value
    mean = jnp.mean(h, axis=-1, keepdims=True)
    var = jnp.mean((h - mean) ** 2, axis=-1, keepdims=True)
    return (h - mean) * jax.lax.rsqrt(var + LN_EPS) * gamma + beta


if __name__ == "__main__":
    key = jax.random.PRNGKey(0)
    k_x, k_p = jax.random.split(key)

    batch, seq, hidden = 2, 8, 32
    x = jax.random.normal(k_x, (batch, seq, hidden), jnp.float32)
    params = init_params(k_p, hidden)

    # Default bf16 MXU path (weights fused/cast once, outside the hot path).
    fused_bf16 = prepare_params(*params)                       # bf16 weights
    out_bf16 = jax.block_until_ready(state_coupling(x, fused_bf16))
    assert out_bf16.shape == x.shape

    # Tight check vs a reference with matching matmul numerics.
    ref_bf16 = reference(x, *params, compute_dtype=jnp.bfloat16)
    assert jnp.allclose(out_bf16, ref_bf16, atol=2e-3, rtol=2e-3), \
        "mismatch vs bf16-matmul reference"

    # Sanity check vs the pure-f32 reference (bf16 rounding tolerance).
    ref_f32 = reference(x, *params, compute_dtype=jnp.float32)
    assert jnp.allclose(out_bf16, ref_f32, atol=1e-1, rtol=1e-1), \
        "bf16 kernel drifted too far from f32 reference"

    # Full-f32 kernel path must match the f32 reference tightly.
    fused_f32 = prepare_params(*params, compute_dtype=jnp.float32)
    out_f32 = jax.block_until_ready(state_coupling(x, fused_f32))
    assert jnp.allclose(out_f32, ref_f32, atol=1e-4, rtol=1e-4), \
        "mismatch vs f32 reference"

    print("KERNEL_OK")
</pallas_src>

<mosaic_0001>
module attributes {stable_mosaic.version = 11 : i64} {
  func.func @state_coupling_kernel(%arg0: i32, %arg1: memref<8x32xf32, #tpu.memory_space<vmem>>, %arg2: memref<32x64xbf16, #tpu.memory_space<vmem>>, %arg3: memref<1x64xf32, #tpu.memory_space<vmem>>, %arg4: memref<1x32xf32, #tpu.memory_space<vmem>>, %arg5: memref<1x32xf32, #tpu.memory_space<vmem>>, %arg6: memref<8x32xf32, #tpu.memory_space<vmem>>) attributes {dimension_semantics = [#tpu.dimension_semantics<parallel>], iteration_bounds = array<i64: 2>, scalar_prefetch = 0 : i64, scratch_operands = 0 : i64, tpu.core_type = #tpu.core_type<tc>, window_params = [{transform_indices = @transform_0, window_bounds = array<i64: 8, 32>}, {pipeline_mode = #tpu.pipeline_mode<synchronous>, transform_indices = @transform_1, window_bounds = array<i64: 32, 64>}, {pipeline_mode = #tpu.pipeline_mode<synchronous>, transform_indices = @transform_2, window_bounds = array<i64: 1, 64>}, {pipeline_mode = #tpu.pipeline_mode<synchronous>, transform_indices = @transform_3, window_bounds = array<i64: 1, 32>}, {pipeline_mode = #tpu.pipeline_mode<synchronous>, transform_indices = @transform_4, window_bounds = array<i64: 1, 32>}, {transform_indices = @transform_5, window_bounds = array<i64: 8, 32>}]} {
    %c0 = arith.constant 0 : index
    %c0_0 = arith.constant 0 : index
    %0 = vector.load %arg2[%c0, %c0_0] : memref<32x64xbf16, #tpu.memory_space<vmem>>, vector<32x64xbf16>
    %c0_1 = arith.constant 0 : index
    %c0_2 = arith.constant 0 : index
    %1 = vector.load %arg3[%c0_1, %c0_2] : memref<1x64xf32, #tpu.memory_space<vmem>>, vector<1x64xf32>
    %c0_3 = arith.constant 0 : index
    %c0_4 = arith.constant 0 : index
    %2 = vector.load %arg4[%c0_3, %c0_4] : memref<1x32xf32, #tpu.memory_space<vmem>>, vector<1x32xf32>
    %c0_5 = arith.constant 0 : index
    %c0_6 = arith.constant 0 : index
    %3 = vector.load %arg5[%c0_5, %c0_6] : memref<1x32xf32, #tpu.memory_space<vmem>>, vector<1x32xf32>
    %c0_7 = arith.constant 0 : index
    %c0_8 = arith.constant 0 : index
    %4 = vector.load %arg1[%c0_7, %c0_8] : memref<8x32xf32, #tpu.memory_space<vmem>>, vector<8x32xf32>
    %5 = arith.truncf %4 : vector<8x32xf32> to vector<8x32xbf16>
    %cst = arith.constant dense<0.000000e+00> : vector<8x64xf32>
    %6 = tpu.matmul %5, %0, %cst {dimension_numbers = #tpu.dot_dimension_numbers<[1], [0], [0], [1], [0, 0, 1, 1], [], []>} : vector<8x32xbf16>, vector<32x64xbf16>, vector<8x64xf32> -> vector<8x64xf32>
    %7 = vector.broadcast %1 : vector<1x64xf32> to vector<8x64xf32>
    %8 = arith.addf %6, %7 : vector<8x64xf32>
    %9 = vector.extract_strided_slice %8 {offsets = [0, 0], sizes = [8, 32], strides = [1, 1]} : vector<8x64xf32> to vector<8x32xf32>
    %10 = arith.negf %9 : vector<8x32xf32>
    %11 = math.exp %10 : vector<8x32xf32>
    %cst_9 = arith.constant 1.000000e+00 : f32
    %12 = vector.broadcast %cst_9 : f32 to vector<8x32xf32>
    %13 = arith.addf %12, %11 : vector<8x32xf32>
    %14 = arith.divf %12, %13 : vector<8x32xf32>
    %15 = vector.extract_strided_slice %8 {offsets = [0, 32], sizes = [8, 32], strides = [1, 1]} : vector<8x64xf32> to vector<8x32xf32>
    %16 = arith.mulf %14, %15 : vector<8x32xf32>
    %cst_10 = arith.constant dense<0.000000e+00> : vector<8xf32>
    %17 = vector.multi_reduction <add>, %16, %cst_10 [1] : vector<8x32xf32> to vector<8xf32>
    %18 = vector.shape_cast %17 : vector<8xf32> to vector<8x1xf32>
    %cst_11 = arith.constant 3.200000e+01 : f32
    %19 = vector.broadcast %cst_11 : f32 to vector<8x1xf32>
    %20 = arith.divf %18, %19 : vector<8x1xf32>
    %21 = vector.broadcast %20 : vector<8x1xf32> to vector<8x32xf32>
    %22 = arith.subf %16, %21 : vector<8x32xf32>
    %23 = arith.mulf %22, %22 : vector<8x32xf32>
    %cst_12 = arith.constant dense<0.000000e+00> : vector<8xf32>
    %24 = vector.multi_reduction <add>, %23, %cst_12 [1] : vector<8x32xf32> to vector<8xf32>
    %25 = vector.shape_cast %24 : vector<8xf32> to vector<8x1xf32>
    %cst_13 = arith.constant 3.200000e+01 : f32
    %26 = vector.broadcast %cst_13 : f32 to vector<8x1xf32>
    %27 = arith.divf %25, %26 : vector<8x1xf32>
    %cst_14 = arith.constant 9.99999974E-6 : f32
    %28 = vector.broadcast %cst_14 : f32 to vector<8x1xf32>
    %29 = arith.addf %27, %28 : vector<8x1xf32>
    %30 = math.rsqrt %29 : vector<8x1xf32>
    %31 = vector.broadcast %30 : vector<8x1xf32> to vector<8x32xf32>
    %32 = arith.mulf %22, %31 : vector<8x32xf32>
    %33 = vector.broadcast %2 : vector<1x32xf32> to vector<8x32xf32>
    %34 = arith.mulf %32, %33 : vector<8x32xf32>
    %35 = vector.broadcast %3 : vector<1x32xf32> to vector<8x32xf32>
    %36 = arith.addf %34, %35 : vector<8x32xf32>
    %c0_15 = arith.constant 0 : index
    %c0_16 = arith.constant 0 : index
    %37 = vector.load %arg6[%c0_15, %c0_16] : memref<8x32xf32, #tpu.memory_space<vmem>>, vector<8x32xf32>
    tpu.vector_store %arg6[%c0_15, %c0_16], %36 {strides = array<i32>} : memref<8x32xf32, #tpu.memory_space<vmem>>, vector<8x32xf32>,
    return
  }
  func.func @transform_0(%arg0: i32) -> (i32, i32) {
    %c0_i32 = arith.constant 0 : i32
    %c0_i32_0 = arith.constant 0 : i32
    return %arg0, %c0_i32 : i32, i32
  }
  func.func @transform_1(%arg0: i32) -> (i32, i32) {
    %c0_i32 = arith.constant 0 : i32
    %c0_i32_0 = arith.constant 0 : i32
    %c0_i32_1 = arith.constant 0 : i32
    return %c0_i32, %c0_i32_0 : i32, i32
  }
  func.func @transform_2(%arg0: i32) -> (i32, i32) {
    %c0_i32 = arith.constant 0 : i32
    %c0_i32_0 = arith.constant 0 : i32
    %c0_i32_1 = arith.constant 0 : i32
    return %c0_i32, %c0_i32_0 : i32, i32
  }
  func.func @transform_3(%arg0: i32) -> (i32, i32) {
    %c0_i32 = arith.constant 0 : i32
    %c0_i32_0 = arith.constant 0 : i32
    %c0_i32_1 = arith.constant 0 : i32
    return %c0_i32, %c0_i32_0 : i32, i32
  }
  func.func @transform_4(%arg0: i32) -> (i32, i32) {
    %c0_i32 = arith.constant 0 : i32
    %c0_i32_0 = arith.constant 0 : i32
    %c0_i32_1 = arith.constant 0 : i32
    return %c0_i32, %c0_i32_0 : i32, i32
  }
  func.func @transform_5(%arg0: i32) -> (i32, i32) {
    %c0_i32 = arith.constant 0 : i32
    %c0_i32_0 = arith.constant 0 : i32
    return %arg0, %c0_i32 : i32, i32
  }
}

</mosaic_0001>

<bundles_post_ra>
// kernel: tpu_custom_call.1
= control target key start
LH: loop header
LB: loop body
LE: loop exit
PB: predicated region body
PF: predicated region fallthrough
CT: control target
= control target key end

     0   :  { %10 = vsyncpa [#allocation3], 0  ;;  %s944_s0 = inlined_call_operand.hbm [shape: f32[16,32], index: 0, kind: input, shape index: {}]   ;;  %s945_s1 = inlined_call_operand.hbm [shape: bf16[32,64], index: 1, kind: input, shape index: {}]   ;;  %s946_s2 = inlined_call_operand.vmem [shape: f32[1,64], index: 2, kind: input, shape index: {}]   ;;  %s947_s3 = inlined_call_operand.vmem [shape: f32[1,32], index: 3, kind: input, shape index: {}]   ;;  %s948_s4 = inlined_call_operand.vmem [shape: f32[1,32], index: 4, kind: input, shape index: {}]   ;;  %s949_s5 = inlined_call_operand.hbm [shape: f32[16,32], index: 5, kind: output, shape index: {}]  }
   0x1   :  { %12 = vsyncpa [#allocation3 + $0x1], 0 }
   0x2   :  { %13 = vsyncpa [#allocation6], 0 }
   0x3   :  { %14 = vsyncpa [#allocation4], 0 }
   0x4   :  { %16 = vsyncpa [#allocation4 + $0x1], 0  ;;  %s731_s18 = smov 0   ;;  %s733_s19 = smov 0  }
   0x5   :  { %s735_s20 = smov 0   ;;  %s737_s21 = smov 0  }
   0x6 LB: > { %s752_s22 = sadd.s32 4294967295, %s691_s21   ;;  %s461_s23 = sadd.s32 4294967294, %s691_s21   ;;  %s691_s21 = sphi %s737_s21, %s969_s21   ;;  %s687_s20 = sphi %s735_s20, %s968_s20   ;;  %s683_s19 = sphi %s733_s19, %s967_s19   ;;  %s679_s18 = sphi %s731_s18, %s966_s18  }
   0x7   : > { %p42_p0 = scmp.ne.s32.totalorder %s683_s19, %s679_s18  ;;  %p950_p1 = scmp.eq.s32.totalorder %s752_s22, 0 }
   0x8   : > { %p156_p3 = scmp.eq.s32.totalorder %s461_s23, 1  ;;  %p462_p5 = scmp.ge.s32.totalorder %s691_s21, 1 }
   0x9   : > { %p761_p4 = por %p950_p1, %p42_p0  ;;  %p163_p7 = scmp.lt.s32.totalorder %s691_s21, 3 }
   0xa   : > { %p766_p6 = por %p156_p3, %p42_p0  ;;  %s693_s27 = smov [#allocation5]  }
   0xb   : > { %s953_s24 = scalar_select %p761_p4, 1, 0 }
   0xc   : > { %s954_s25 = scalar_select %p766_p6, 1, 0 }
   0xd   : > { %p771_p8 = pnand %p462_p5, %p163_p7  ;;  %s175_s28 = sshll.u32 %s693_s27, 4  ;;  %s775_s28 = int_to_ptr.vmem [resolvable:$true] %s175_s28 }
   0xe   : > { %s787_s30 = sadd.s32 1, %s691_s21   ;;  %s29_s6 = sadd.s32 1, %s687_s20 }
   0xf   : > { %s955_s26 = scalar_select %p771_p8, 1, 0 }
  0x10   : > { %p501_p9 = pneg %p771_p8  ;;  %s26_s7 = ssub.s32 %s691_s21, %s787_s30 }
  0x11   : > { %s563_s10 = scalar_lea.hbm %s945_s1, 256 }
  0x12   : > { %p782_p11 = pnand %p501_p9, %p950_p1  ;;  %p564_p12 = scmp.ne.s32.totalorder %s945_s1, %s563_s10 }
  0x13   : > { %p570_p5 = scmp.lt.u32.totalorder %s563_s10, %s945_s1 }
  0x14   : > { %p565_p13 = pneg %p782_p11 }
  0x16   : > { %p566_p0 = pnand %p565_p13, %p564_p12 }
  0x18   : > { %p567_p3 = pneg %p566_p0 }
  0x1a   : > { %p572_p7 = pnand %p570_p5, %p567_p3 }
  0x1c   : > { %575 = shalt.err (!%p572_p7)
}
  0x1d   : > { %s576_s15 = scalar_lea.vmem %s775_s28, 256  ;;  %p584_p2 = scmp.lt.s32.totalorder %s775_s28, %s775_s28 }
  0x1e   : > { %p577_p9 = scmp.ne.s32.totalorder %s775_s28, %s576_s15  ;;  %p585_p6 = scmp.lt.s32.totalorder %s576_s15, %s576_s15 }
  0x20   : > { %p579_p10 = pnand %p577_p9, %p565_p13  ;;  %p586_p4 = por %p585_p6, %p584_p2 }
  0x22   : > { %p580_p1 = pneg %p579_p10 }
  0x24   : > { %p587_p8 = pnand %p586_p4, %p580_p1 }
  0x26   : > { %590 = shalt.err (!%p587_p8)
}
  0x27   : > { %s694_s16 = smov 64   ;;  %s695_s17 = smov 4  }
  0x28   : > { %504 = dma.hbm_to_vmem [thread:$0]  (!%p782_p11), %s945_s1, 256, %s775_s28, [#allocation6], %s694_s16, %s694_s16, %s695_s17  }
  0x29   : > { %p27_p2 = scmp.eq.s32.totalorder %s26_s7, 0  ;;  %p36_p1 = scmp.ne.s32.totalorder %s687_s20, %s683_s19 }
  0x2a   : > { %p37_p4 = scmp.eq.s32.totalorder %s691_s21, 0  ;;  %p514_p6 = scmp.lt.s32.totalorder %s691_s21, 2 }
  0x2b   : > { %s818_s8 = scalar_select %p27_p2, %s687_s20, %s29_s6  }
  0x2c   : > { %p38_p8 = por %p37_p4, %p36_p1  ;;  %p957_p10 = scmp.eq.s32.totalorder %s752_s22, 1 }
  0x2d   : > { %s198_s10 = sand.u32 1, %s687_s20   ;;  %s466_s11 = sshll.u32 %s691_s21, 7 }
  0x2e   : > { %p822_p12 = por %p957_p10, %p36_p1  ;;  %s465_s12 = sshll.u32 %s198_s10, 3 }
  0x2f   : > { %s831_s14 = scalar_lea.hbm %s944_s0, %s466_s11  ;;  %s202_s28 = scalar_lea.vmem [#allocation2], %s465_s12 }
  0x30   : > { %s209_s6 = sshll.u32 %s202_s28, 4  ;;  %p833_p11 = pnand %p514_p6, %p38_p8  ;;  %s837_s6 = int_to_ptr.vmem [resolvable:$true] %s209_s6 }
  0x31   : > { %s199_s15 = scalar_lea.sflag [#allocation3], %s198_s10  ;;  %s591_s16 = scalar_lea.hbm %s831_s14, 128 }
  0x32   : > { %p592_p13 = scmp.ne.s32.totalorder %s831_s14, %s591_s16  ;;  %p593_p0 = pneg %p833_p11 }
  0x33   : > { %s596_s27 = scalar_lea.hbm %s944_s0, 256  ;;  %p597_p7 = scmp.lt.u32.totalorder %s831_s14, %s944_s0 }
  0x34   : > { %p594_p3 = pnand %p593_p0, %p592_p13  ;;  %p598_p9 = scmp.lt.u32.totalorder %s596_s27, %s591_s16 }
  0x35   : > { %p600_p1 = scmp.lt.u32.totalorder %s591_s16, %s831_s14 }
  0x36   : > { %p595_p5 = pneg %p594_p3  ;;  %p599_p2 = por %p598_p9, %p597_p7 }
  0x38   : > { %p601_p4 = por %p600_p1, %p599_p2 }
  0x3a   : > { %p602_p6 = pnand %p601_p4, %p595_p5 }
  0x3c   : > { %605 = shalt.err (!%p602_p6)
}
  0x3d   : > { %s606_s10 = scalar_lea.vmem %s837_s6, 128  ;;  %s696_s29 = smov [#allocation2]  }
  0x3e   : > { %p607_p8 = scmp.ne.s32.totalorder %s837_s6, %s606_s10  ;;  %s611_s13 = sshll.u32 %s696_s29, 4  ;;  %s612_s13 = int_to_ptr.vmem [resolvable:$false] %s611_s13 }
  0x3f   : > { %s613_s28 = scalar_lea.vmem %s612_s13, 256  ;;  %p614_p3 = scmp.lt.s32.totalorder %s837_s6, %s612_s13 }
  0x40   : > { %p609_p10 = pnand %p607_p8, %p593_p0  ;;  %p615_p7 = scmp.lt.s32.totalorder %s613_s28, %s606_s10 }
  0x42   : > { %p610_p13 = pneg %p609_p10  ;;  %p616_p9 = por %p615_p7, %p614_p3 }
  0x44   : > { %p617_p2 = pnand %p616_p9, %p610_p13 }
  0x46   : > { %620 = shalt.err (!%p617_p2)
}
  0x47   : > { %508 = dma.hbm_to_vmem [thread:$0]  (!%p833_p11), %s831_s14, 128, %s837_s6, %s199_s15  }
  0x48   : > { %p960_p5 = scmp.ne.s32.totalorder %s955_s26, 0 }
  0x49   : > { %s867_s16 = sand.u32 (!%p960_p5), 1, %s683_s19   ;;  %p961_p0 = scmp.ne.s32.totalorder (!%p960_p5), %s953_s24, 0 }
  0x4a   : > { %218 = sbr.rel (%p960_p5) target bundleno = 752 (0x2f0), region = 40  ;;  %s468_s17 = sshll.u32 (!%p960_p5), %s867_s16, 3 }
  0x4b   : > { %s221_s23 = scalar_lea.sflag (!%p960_p5), [#allocation3], %s867_s16  ;;  %s224_s27 = scalar_lea.vmem (!%p960_p5), [#allocation2], %s468_s17 }
  0x51   : > { %666 = dma.done.wait (%p961_p0), %s221_s23, 128  }
  0x52   : > { %668 = vsyncadd (%p961_p0), %s221_s23, 4294967168  ;;  %p962_p11 = scmp.eq.s32.totalorder %s752_s22, 0 }
  0x54   : > { %670 = dma.done.wait (%p962_p11), [#allocation6], 256   ;;  %p963_p1 = pmov %p962_p11 }
  0x55   : > { %v697_v0 = vmov 0.0   ;;  %vm698_vm0 = vmmov 0   ;;  %v555_v1 = vld [vmem:[#allocation5] sm:$0xff]   ;;  %v556_v2 = vld [vmem:[#allocation5 + $0x8] sm:$0xff]   ;;  %v263_v3 = vld [vmem:[%s224_s27] sm:$0xff]  ;;  %vm283_vm1 = vcmask 261120  }
  0x56   : > { %672 = vsyncadd (%p963_p1), [#allocation6], 4294967040  ;;  %485 = vmatprep.subr.bf16.mxu0 %v697_v0  ;;  %489 = vmatprep.mubr.msk.bf16.mxu0 %vm698_vm0, %v697_v0  ;;  %v264_v4 = vpack.c.bf16 %v263_v3, %v263_v3  ;;  %v471_v5 = vld [vmem:[%s946_s2] ss:$0 sm:$0xff]  ;;  %s699_s14 = smov 96   ;;  %s479_s12 = sshll.u32 %s752_s22, 7 }
  0x57   : > { %486 = vmatpush3.bf16.msra.mxu0 %v555_v1  ;;  %v476_v27 = vld [vmem:[%s947_s3] ss:$0 sm:$0xff]  ;;  %s254_s10 = scalar_lea.vmem [#allocation7], %s468_s17  ;;  %s899_s23 = scalar_lea.hbm %s949_s5, %s479_s12 }
  0x58   : > { %487 = vmatprep.subr.bf16.mxu0 %v697_v0  ;;  %v477_v29 = vld [vmem:[%s948_s4] ss:$0 sm:$0xff]  ;;  %s381_s29 = sshll.u32 %s254_s10, 4  ;;  %s368_s27 = scalar_lea.sflag [#allocation4], %s867_s16  ;;  %s901_s29 = int_to_ptr.vmem [resolvable:$true] %s381_s29 }
  0x59   : > { %s621_s24 = scalar_lea.vmem %s901_s29, 128  ;;  %s700_s22 = smov [#allocation7]  }
  0x5a   : > { %p622_p4 = scmp.ne.s32.totalorder %s901_s29, %s621_s24  ;;  %s625_s17 = sshll.u32 %s700_s22, 4  ;;  %s626_s17 = int_to_ptr.vmem [resolvable:$false] %s625_s17 }
  0x5b   : > { %488 = vmatpush3.bf16.msra.mxu0 %v556_v2  ;;  %s627_s26 = scalar_lea.vmem %s626_s17, 256  ;;  %p628_p10 = scmp.lt.s32.totalorder %s901_s29, %s626_s17 }
  0x5c   : > { %p623_p6 = pnand %p622_p4, %p822_p12  ;;  %p629_p13 = scmp.lt.s32.totalorder %s627_s26, %s621_s24 }
  0x5e   : > { %490 = vmatmul.mubr.msk.bf16.vlgmr.msra.gmra.mrb[0].mxu0 %vm283_vm1, %v264_v4  ;;  %p624_p8 = pneg %p623_p6  ;;  %p630_p3 = por %p629_p13, %p628_p10 }
  0x60   : > { %p631_p7 = pnand %p630_p3, %p624_p8 }
 0x131   : > { %v321_v6 = vpop.f32.mrb[0].mxu0 }
 0x132   : > { %v322_v7 = vadd.f32 %v471_v5, %v321_v6  ;;  %v491_v8 = vpop.f32.mrb[1].mxu0 }
 0x133   : > { %v324_v9 = vpop.f32.mrb[2].mxu0 }
 0x134   : > { %334 = vrot.lane.b32.xlu0 %v322_v7, %s699_s14  ;;  %v492_v10 = vpop.f32.mrb[3].mxu0  ;;  %v475_v11 = vmul.f32 -1.442695, %v322_v7 }
 0x136   : > { %557 = vpow2.f32 %v475_v11 }
 0x140   : > { %v558_v12 = vpop.eup %557 }
 0x141   : > { %v330_v13 = vadd.f32 1.0, %v558_v12 }
 0x143   : > { %559 = vrcp.f32 %v330_v13 }
 0x14d   : > { %v560_v14 = vpop.eup %559 }
 0x1a6   : > { %v335_v15 = vpop.permute.xlu0 %334 }
 0x1a7   : > { %v337_v16 = vmul.f32 %v560_v14, %v335_v15 }
 0x1a9   : > { %v338_v17 = vsel %vm283_vm1, %v337_v16, 0.0 }
 0x1aa   : > { %339 = vadd.xlane.f32.xlu0 %v338_v17 }
 0x237   : > { %v340_v18 = vpop.xlane.xlu0 %339 }
 0x238   : > { %v342_v19 = vmul.f32 0.03125, %v340_v18 }
 0x23a   : > { %v343_v20 = vsub.f32 %v337_v16, %v342_v19 }
 0x23c   : > { %v344_v21 = vmul.f32 %v343_v20, %v343_v20 }
 0x23e   : > { %v345_v22 = vsel %vm283_vm1, %v344_v21, 0.0 }
 0x23f   : > { %346 = vadd.xlane.f32.xlu1 %v345_v22 }
 0x2cc   : > { %v347_v23 = vpop.xlane.xlu1 %346 }
 0x2cd   : > { %v348_v24 = vmul.f32 0.03125, %v347_v23 }
 0x2cf   : > { %v349_v25 = vadd.f32 1e-05, %v348_v24 }
 0x2d1   : > { %561 = vrsqrt.f32 %v349_v25 }
 0x2db   : > { %v562_v26 = vpop.eup %561 }
 0x2dc   : > { %v351_v28 = vmul.f32 %v562_v26, %v343_v20 }
 0x2de   : > { %v358_v30 = vmul.f32 %v476_v27, %v351_v28 }
 0x2e0   : > { %v365_v31 = vadd.f32 %v477_v29, %v358_v30 }
 0x2e2   : > { %366 = vst.msk [vmem:[%s254_s10] sm:$0xff] %vm283_vm1, %v365_v31 }
 0x2e3   : > { %634 = shalt.err (!%p631_p7)
}
 0x2e4   : > { %s635_s16 = scalar_lea.hbm %s899_s23, 128  ;;  %s639_s7 = scalar_lea.hbm %s949_s5, 256 }
 0x2e5   : > { %p636_p9 = scmp.ne.s32.totalorder %s899_s23, %s635_s16  ;;  %p640_p0 = scmp.lt.u32.totalorder %s899_s23, %s949_s5 }
 0x2e6   : > { %p641_p11 = scmp.lt.u32.totalorder %s639_s7, %s635_s16  ;;  %p643_p4 = scmp.lt.u32.totalorder %s635_s16, %s899_s23 }
 0x2e7   : > { %p637_p2 = pnand %p636_p9, %p822_p12 }
 0x2e8   : > { %p642_p1 = por %p641_p11, %p640_p0 }
 0x2e9   : > { %p638_p5 = pneg %p637_p2 }
 0x2ea   : > { %p644_p6 = por %p643_p4, %p642_p1 }
 0x2ec   : > { %p645_p8 = pnand %p644_p6, %p638_p5 }
 0x2ee   : > { %648 = shalt.err (!%p645_p8)
}
 0x2ef   : > { %499 = dma.vmem_to_hbm [thread:$0]  (%p822_p12), %s901_s29, 128, %s899_s23, %s368_s27  }
 0x2f0 PF: > { %s393_s12 = sand.u32 1, %s679_s18   ;;  %p964_p10 = scmp.ne.s32.totalorder %s954_s25, 0 }
 0x2f1   : > { %p965_p13 = scmp.ge.s32.totalorder %s691_s21, 2  ;;  %s394_s10 = scalar_lea.sflag [#allocation4], %s393_s12 }
 0x2f3   : > { %p510_p3 = pnand %p965_p13, %p964_p10 }
 0x2f5   : > { %674 = dma.done.wait (!%p510_p3), %s394_s10, 128  }
 0x2f6   : > { %676 = vsyncadd (!%p510_p3), %s394_s10, 4294967168  ;;  %p19_p7 = scmp.ge.s32.totalorder %s787_s30, 4   ;;  %s966_s18 = smov %s683_s19 }
 0x2f7   : > { %s967_s19 = smov %s687_s20  ;;  %s968_s20 = smov %s818_s8 }
 0x2f8   : > { %s969_s21 = smov %s787_s30  ;;  %21 = sbr.rel (!%p19_p7) target bundleno = 6 (0x6), region = 89 }
 0x2ff   :  { %399 = vsyncpa [#allocation3], 1 }
 0x300   :  { %401 = vsyncpa [#allocation3 + $0x1], 1 }
 0x301   :  { %402 = vsyncpa [#allocation6], 1 }
 0x302   :  { %403 = vsyncpa [#allocation4], 1 }
 0x303   :  { %405 = vsyncpa [#allocation4 + $0x1], 1 }

</bundles_post_ra>
